<compile_context>
chip_gen: v7x
topology: tpu7x:2x2x1
jax: 0.10.0
libtpu: 0.0.40
codegen_flags: <defaults>
</compile_context>

<pallas_src>
import jax
import jax.numpy as jnp
from jax import lax
from jax.experimental import pallas as pl
from jax.experimental.pallas import tpu as pltpu


# ----------------------------- Pallas kernel -------------------------------- #

def _make_kernel(img_w, c_red, compute_dtype):
    """Kernel closure over static image width, reduced channel count, dtype."""
    cdt = compute_dtype

    def kernel(x_ref, m_ref, w1_ref, w2_ref, wg2_ref, o_ref):
        bt, C, HWp = x_ref.shape
        Cr = c_red

        # Boundary masks for the shift-and-add pool, shape (1, HWp) each; pad
        # lanes (if any) are zero in every mask.
        m = m_ref[...]                                   # (4, HWp) f32
        m_l, m_r, m_u, m_d = m[0:1], m[1:2], m[2:3], m[3:4]
        sh_above = img_w % HWp                           # row above -> this row
        sh_below = (HWp - img_w) % HWp                   # row below -> this row

        w1 = w1_ref[...]                                 # (3Cr, C)  cdt
        w2 = w2_ref[...]                                 # (C, 2Cr)  cdt
        wg2 = wg2_ref[...]                               # (C, Cr)   cdt

        for bi in range(bt):                             # static, small unroll
            x = x_ref[bi]                                # (C, HWp), input dtype
            xf = x.astype(jnp.float32)                   # f32 epilogue/residual

            # --- single stacked first-layer 1x1 conv: [pw; la/9; gap/HW] @ x ---
            y = jnp.dot(w1, x.astype(cdt),
                        preferred_element_type=jnp.float32)        # (3Cr, HWp)
            y_pw = y[0:Cr]
            y_la = y[Cr:2 * Cr]
            y_gap = y[2 * Cr:3 * Cr]

            # --- 3x3 avg pool (zero pad, /9 folded into w1) on Cr rows only ---
            row = (y_la
                   + m_l * pltpu.roll(y_la, shift=1, axis=1)
                   + m_r * pltpu.roll(y_la, shift=HWp - 1, axis=1))
            pooled = (row
                      + m_u * pltpu.roll(row, shift=sh_above, axis=1)
                      + m_d * pltpu.roll(row, shift=sh_below, axis=1))

            # --- GAP branch: lane sum (1/HW already folded into w1) + ReLU ---
            gvec = jnp.maximum(jnp.sum(y_gap, axis=1, keepdims=True), 0.0)  # (Cr,1)

            # --- fused second layer: [pw_w2 | la_w2] @ [relu(pw); relu(pool)] ---
            h = jnp.concatenate([jnp.maximum(y_pw, 0.0),
                                 jnp.maximum(pooled, 0.0)],
                                axis=0).astype(cdt)                 # (2Cr, HWp)
            p_plus_l = jnp.dot(w2, h,
                               preferred_element_type=jnp.float32)  # (C, HWp)

            # --- tiny gap second layer (broadcast to 128 lanes for MXU shape) ---
            g_in = jnp.broadcast_to(gvec, (Cr, 128)).astype(cdt)
            g = jnp.dot(wg2, g_in,
                        preferred_element_type=jnp.float32)[:, 0:1]  # (C, 1)

            att = p_plus_l + g                                      # (C, HWp) f32
            out = xf * jax.nn.sigmoid(att) + xf                     # f32 epilogue
            o_ref[bi] = out.astype(o_ref.dtype)

    return kernel


# ------------------------------- wrapper ------------------------------------ #

def channel_attention_pallas(x_nchw, params, compute_dtype=None):
    B, C, H, W = x_nchw.shape
    HW = H * W
    Cr = params["gap_w1"].shape[0]
    in_dtype = x_nchw.dtype
    cdt = jnp.dtype(compute_dtype) if compute_dtype is not None else jnp.dtype(in_dtype)

    # Free reshape NCHW -> (B, C, HW); pad HW to a multiple of 128 (lane-dense).
    HWp = max(128, ((HW + 127) // 128) * 128)
    x_flat = x_nchw.reshape(B, C, HW)
    if HWp != HW:
        x_flat = jnp.pad(x_flat, ((0, 0), (0, 0), (0, HWp - HW)))

    # Boundary masks for the separable 3x3 pool (pad lanes get all-zero masks).
    idx = jnp.arange(HWp, dtype=jnp.int32)
    col, rowi = idx % W, idx // W
    valid = idx < HW
    masks = jnp.stack([
        (col != 0) & valid,        # can take left neighbour
        (col != W - 1) & valid,    # can take right neighbour
        (rowi != 0) & valid,       # can take row above
        (rowi != H - 1) & valid,   # can take row below
    ]).astype(jnp.float32)                                         # (4, HWp)

    # Host-side algebraic fusion of the 1x1 conv weights (scales folded in f32).
    f32 = jnp.float32
    w1cat = jnp.concatenate([
        params["pw_w1"].astype(f32),
        params["la_w1"].astype(f32) * (1.0 / 9.0),
        params["gap_w1"].astype(f32) * (1.0 / HW),
    ], axis=0).astype(cdt)                                         # (3Cr, C)
    w2cat = jnp.concatenate([params["pw_w2"], params["la_w2"]],
                            axis=1).astype(cdt)                    # (C, 2Cr)
    wg2 = params["gap_w2"].astype(cdt)                             # (C, Cr)

    # Merge small batches per grid step, but keep >= 2 parallel steps when
    # B >= 2 so both v7x TensorCores are used.
    per_batch_bytes = C * HWp * jnp.dtype(in_dtype).itemsize
    bt = 1
    for cand in range(1, B + 1):
        if B % cand != 0:
            continue
        if cand * per_batch_bytes > (1 << 20):
            continue
        if B >= 2 and B // cand < 2:
            continue
        bt = cand
    n_steps = B // bt

    # VMEM budget sized to the real blocks, capped by the local generation's
    # physical VMEM (64 MiB on v7x, 128 MiB on v5e/v6e) minus headroom.
    block_bytes = bt * C * HWp * 4
    try:
        phys = int(pltpu.get_tpu_info().vmem_capacity_bytes)
    except Exception:
        phys = 64 * 1024 * 1024
    cap = max(16 * 1024 * 1024, phys - 16 * 1024 * 1024)
    vmem_limit = int(min(cap, max(32 * 1024 * 1024, 16 * block_bytes)))

    full2 = lambda i: (0, 0)
    out_flat = pl.pallas_call(
        _make_kernel(W, Cr, cdt),
        out_shape=jax.ShapeDtypeStruct((B, C, HWp), in_dtype),
        grid_spec=pltpu.PrefetchScalarGridSpec(
            num_scalar_prefetch=0,
            grid=(n_steps,),
            in_specs=[
                pl.BlockSpec((bt, C, HWp), lambda i: (i, 0, 0)),   # x
                pl.BlockSpec((4, HWp), full2),                     # pool masks
                pl.BlockSpec((3 * Cr, C), full2),                  # stacked W1
                pl.BlockSpec((C, 2 * Cr), full2),                  # fused W2
                pl.BlockSpec((C, Cr), full2),                      # gap W2
            ],
            out_specs=pl.BlockSpec((bt, C, HWp), lambda i: (i, 0, 0)),
        ),
        compiler_params=pltpu.CompilerParams(
            dimension_semantics=("parallel",),
            vmem_limit_bytes=vmem_limit),
    )(x_flat, masks, w1cat, w2cat, wg2)

    if HWp != HW:
        out_flat = out_flat[:, :, :HW]
    return out_flat.reshape(B, C, H, W)


# --------------------------- pure-JAX reference ------------------------------ #

def ref_forward(x, w):
    """Mirror of the PyTorch forward (NCHW) for correctness checking."""
    def conv1x1(v, wmat):
        return jnp.einsum("oc,bchw->bohw", wmat, v)

    gap_in = jnp.mean(x, axis=(2, 3), keepdims=True)
    gap = conv1x1(jax.nn.relu(conv1x1(gap_in, w["gap_w1"])), w["gap_w2"])
    pw = conv1x1(jax.nn.relu(conv1x1(x, w["pw_w1"])), w["pw_w2"])
    pooled = lax.reduce_window(
        x, 0.0, lax.add, (1, 1, 3, 3), (1, 1, 1, 1),
        [(0, 0), (0, 0), (1, 1), (1, 1)]) / 9.0
    la = conv1x1(jax.nn.relu(conv1x1(pooled, w["la_w1"])), w["la_w2"])
    # F.interpolate(..., size=(H, W), bilinear, align_corners=True) == identity
    ch_att = gap + pw + la
    return x * jax.nn.sigmoid(ch_att) + x


# --------------------------------- main -------------------------------------- #

if __name__ == "__main__":
    B, C, H, W = 2, 8, 16, 16
    ratio = 4
    Cr = C // ratio

    key = jax.random.PRNGKey(0)
    kx, k1, k2, k3, k4, k5, k6 = jax.random.split(key, 7)
    x = jax.random.normal(kx, (B, C, H, W), jnp.float32)

    params = {
        "gap_w1": 0.2 * jax.random.normal(k1, (Cr, C), jnp.float32),
        "gap_w2": 0.2 * jax.random.normal(k2, (C, Cr), jnp.float32),
        "pw_w1":  0.2 * jax.random.normal(k3, (Cr, C), jnp.float32),
        "pw_w2":  0.2 * jax.random.normal(k4, (C, Cr), jnp.float32),
        "la_w1":  0.2 * jax.random.normal(k5, (Cr, C), jnp.float32),
        "la_w2":  0.2 * jax.random.normal(k6, (C, Cr), jnp.float32),
    }

    ref = ref_forward(x, params)

    # f32 compute path: must match the reference tightly.
    out = channel_attention_pallas(x, params)
    out = jax.block_until_ready(out)
    err = float(jnp.max(jnp.abs(out - ref)))
    assert jnp.allclose(out, ref, atol=1e-4, rtol=1e-4), f"f32 max abs err = {err}"

    # bf16 MXU path: bf16 matmul operands, f32 accumulation, f32 pool/epilogue.
    out_bf16 = channel_attention_pallas(x, params, compute_dtype=jnp.bfloat16)
    out_bf16 = jax.block_until_ready(out_bf16)
    err_bf = float(jnp.max(jnp.abs(out_bf16 - ref)))
    assert jnp.allclose(out_bf16, ref, atol=5e-2, rtol=5e-2), \
        f"bf16 max abs err = {err_bf}"

    print("KERNEL_OK")
</pallas_src>

<mosaic_0001>
module attributes {stable_mosaic.version = 11 : i64} {
  func.func @kernel(%arg0: i32, %arg1: memref<1x8x256xf32, #tpu.memory_space<vmem>>, %arg2: memref<4x256xf32, #tpu.memory_space<vmem>>, %arg3: memref<6x8xf32, #tpu.memory_space<vmem>>, %arg4: memref<8x4xf32, #tpu.memory_space<vmem>>, %arg5: memref<8x2xf32, #tpu.memory_space<vmem>>, %arg6: memref<1x8x256xf32, #tpu.memory_space<vmem>>) attributes {dimension_semantics = [#tpu.dimension_semantics<parallel>], iteration_bounds = array<i64: 2>, scalar_prefetch = 0 : i64, scratch_operands = 0 : i64, tpu.core_type = #tpu.core_type<tc>, window_params = [{transform_indices = @transform_0, window_bounds = array<i64: 1, 8, 256>}, {pipeline_mode = #tpu.pipeline_mode<synchronous>, transform_indices = @transform_1, window_bounds = array<i64: 4, 256>}, {pipeline_mode = #tpu.pipeline_mode<synchronous>, transform_indices = @transform_2, window_bounds = array<i64: 6, 8>}, {pipeline_mode = #tpu.pipeline_mode<synchronous>, transform_indices = @transform_3, window_bounds = array<i64: 8, 4>}, {pipeline_mode = #tpu.pipeline_mode<synchronous>, transform_indices = @transform_4, window_bounds = array<i64: 8, 2>}, {transform_indices = @transform_5, window_bounds = array<i64: 1, 8, 256>}]} {
    %c0 = arith.constant 0 : index
    %c0_0 = arith.constant 0 : index
    %0 = vector.load %arg2[%c0, %c0_0] : memref<4x256xf32, #tpu.memory_space<vmem>>, vector<4x256xf32>
    %1 = vector.extract_strided_slice %0 {offsets = [0, 0], sizes = [1, 256], strides = [1, 1]} : vector<4x256xf32> to vector<1x256xf32>
    %2 = vector.extract_strided_slice %0 {offsets = [1, 0], sizes = [1, 256], strides = [1, 1]} : vector<4x256xf32> to vector<1x256xf32>
    %3 = vector.extract_strided_slice %0 {offsets = [2, 0], sizes = [1, 256], strides = [1, 1]} : vector<4x256xf32> to vector<1x256xf32>
    %4 = vector.extract_strided_slice %0 {offsets = [3, 0], sizes = [1, 256], strides = [1, 1]} : vector<4x256xf32> to vector<1x256xf32>
    %c0_1 = arith.constant 0 : index
    %c0_2 = arith.constant 0 : index
    %5 = vector.load %arg3[%c0_1, %c0_2] : memref<6x8xf32, #tpu.memory_space<vmem>>, vector<6x8xf32>
    %c0_3 = arith.constant 0 : index
    %c0_4 = arith.constant 0 : index
    %6 = vector.load %arg4[%c0_3, %c0_4] : memref<8x4xf32, #tpu.memory_space<vmem>>, vector<8x4xf32>
    %c0_5 = arith.constant 0 : index
    %c0_6 = arith.constant 0 : index
    %7 = vector.load %arg5[%c0_5, %c0_6] : memref<8x2xf32, #tpu.memory_space<vmem>>, vector<8x2xf32>
    %c0_7 = arith.constant 0 : index
    %c0_8 = arith.constant 0 : index
    %c0_9 = arith.constant 0 : index
    %8 = vector.load %arg1[%c0_7, %c0_8, %c0_9] : memref<1x8x256xf32, #tpu.memory_space<vmem>>, vector<1x8x256xf32>
    %9 = vector.shape_cast %8 : vector<1x8x256xf32> to vector<8x256xf32>
    %cst = arith.constant dense<0.000000e+00> : vector<6x256xf32>
    %10 = tpu.matmul %5, %9, %cst {dimension_numbers = #tpu.dot_dimension_numbers<[1], [0], [0], [1], [0, 0, 1, 1], [], []>} : vector<6x8xf32>, vector<8x256xf32>, vector<6x256xf32> -> vector<6x256xf32>
    %11 = vector.extract_strided_slice %10 {offsets = [0, 0], sizes = [2, 256], strides = [1, 1]} : vector<6x256xf32> to vector<2x256xf32>
    %12 = vector.extract_strided_slice %10 {offsets = [2, 0], sizes = [2, 256], strides = [1, 1]} : vector<6x256xf32> to vector<2x256xf32>
    %13 = vector.extract_strided_slice %10 {offsets = [4, 0], sizes = [2, 256], strides = [1, 1]} : vector<6x256xf32> to vector<2x256xf32>
    %c1_i32 = arith.constant 1 : i32
    %14 = tpu.dynamic_rotate %12 by %c1_i32 dim 1 : vector<2x256xf32>, i32 -> vector<2x256xf32>
    %15 = vector.broadcast %1 : vector<1x256xf32> to vector<2x256xf32>
    %16 = arith.mulf %15, %14 : vector<2x256xf32>
    %17 = arith.addf %12, %16 : vector<2x256xf32>
    %c255_i32 = arith.constant 255 : i32
    %18 = tpu.dynamic_rotate %12 by %c255_i32 dim 1 : vector<2x256xf32>, i32 -> vector<2x256xf32>
    %19 = vector.broadcast %2 : vector<1x256xf32> to vector<2x256xf32>
    %20 = arith.mulf %19, %18 : vector<2x256xf32>
    %21 = arith.addf %17, %20 : vector<2x256xf32>
    %c16_i32 = arith.constant 16 : i32
    %22 = tpu.dynamic_rotate %21 by %c16_i32 dim 1 : vector<2x256xf32>, i32 -> vector<2x256xf32>
    %23 = vector.broadcast %3 : vector<1x256xf32> to vector<2x256xf32>
    %24 = arith.mulf %23, %22 : vector<2x256xf32>
    %25 = arith.addf %21, %24 : vector<2x256xf32>
    %c240_i32 = arith.constant 240 : i32
    %26 = tpu.dynamic_rotate %21 by %c240_i32 dim 1 : vector<2x256xf32>, i32 -> vector<2x256xf32>
    %27 = vector.broadcast %4 : vector<1x256xf32> to vector<2x256xf32>
    %28 = arith.mulf %27, %26 : vector<2x256xf32>
    %29 = arith.addf %25, %28 : vector<2x256xf32>
    %cst_10 = arith.constant dense<0.000000e+00> : vector<2xf32>
    %30 = vector.multi_reduction <add>, %13, %cst_10 [1] : vector<2x256xf32> to vector<2xf32>
    %31 = vector.shape_cast %30 : vector<2xf32> to vector<2x1xf32>
    %cst_11 = arith.constant 0.000000e+00 : f32
    %32 = vector.broadcast %cst_11 : f32 to vector<2x1xf32>
    %33 = arith.maximumf %31, %32 : vector<2x1xf32>
    %cst_12 = arith.constant 0.000000e+00 : f32
    %34 = vector.broadcast %cst_12 : f32 to vector<2x256xf32>
    %35 = arith.maximumf %11, %34 : vector<2x256xf32>
    %cst_13 = arith.constant 0.000000e+00 : f32
    %36 = vector.broadcast %cst_13 : f32 to vector<2x256xf32>
    %37 = arith.maximumf %29, %36 : vector<2x256xf32>
    %38 = tpu.concatenate %35, %37 in 0 : vector<2x256xf32>, vector<2x256xf32> -> vector<4x256xf32>
    %cst_14 = arith.constant dense<0.000000e+00> : vector<8x256xf32>
    %39 = tpu.matmul %6, %38, %cst_14 {dimension_numbers = #tpu.dot_dimension_numbers<[1], [0], [0], [1], [0, 0, 1, 1], [], []>} : vector<8x4xf32>, vector<4x256xf32>, vector<8x256xf32> -> vector<8x256xf32>
    %40 = vector.shape_cast %33 : vector<2x1xf32> to vector<2x1xf32>
    %41 = vector.broadcast %40 : vector<2x1xf32> to vector<2x128xf32>
    %cst_15 = arith.constant dense<0.000000e+00> : vector<8x128xf32>
    %42 = tpu.matmul %7, %41, %cst_15 {dimension_numbers = #tpu.dot_dimension_numbers<[1], [0], [0], [1], [0, 0, 1, 1], [], []>} : vector<8x2xf32>, vector<2x128xf32>, vector<8x128xf32> -> vector<8x128xf32>
    %43 = vector.extract_strided_slice %42 {offsets = [0, 0], sizes = [8, 1], strides = [1, 1]} : vector<8x128xf32> to vector<8x1xf32>
    %44 = vector.broadcast %43 : vector<8x1xf32> to vector<8x256xf32>
    %45 = arith.addf %39, %44 : vector<8x256xf32>
    %46 = arith.negf %45 : vector<8x256xf32>
    %47 = math.exp %46 : vector<8x256xf32>
    %cst_16 = arith.constant 1.000000e+00 : f32
    %48 = vector.broadcast %cst_16 : f32 to vector<8x256xf32>
    %49 = arith.addf %48, %47 : vector<8x256xf32>
    %50 = arith.divf %48, %49 : vector<8x256xf32>
    %51 = arith.mulf %9, %50 : vector<8x256xf32>
    %52 = arith.addf %51, %9 : vector<8x256xf32>
    %c0_17 = arith.constant 0 : index
    %c0_18 = arith.constant 0 : index
    %c0_19 = arith.constant 0 : index
    %53 = vector.load %arg6[%c0_17, %c0_18, %c0_19] : memref<1x8x256xf32, #tpu.memory_space<vmem>>, vector<1x8x256xf32>
    %54 = vector.shape_cast %53 : vector<1x8x256xf32> to vector<8x256xf32>
    %55 = vector.shape_cast %52 : vector<8x256xf32> to vector<1x8x256xf32>
    tpu.vector_store %arg6[%c0_17, %c0_18, %c0_19], %55 {strides = array<i32>} : memref<1x8x256xf32, #tpu.memory_space<vmem>>, vector<1x8x256xf32>,
    return
  }
  func.func @transform_0(%arg0: i32) -> (i32, i32, i32) {
    %c0_i32 = arith.constant 0 : i32
    %c0_i32_0 = arith.constant 0 : i32
    %c0_i32_1 = arith.constant 0 : i32
    return %arg0, %c0_i32, %c0_i32_0 : i32, i32, i32
  }
  func.func @transform_1(%arg0: i32) -> (i32, i32) {
    %c0_i32 = arith.constant 0 : i32
    %c0_i32_0 = arith.constant 0 : i32
    %c0_i32_1 = arith.constant 0 : i32
    return %c0_i32, %c0_i32_0 : i32, i32
  }
  func.func @transform_2(%arg0: i32) -> (i32, i32) {
    %c0_i32 = arith.constant 0 : i32
    %c0_i32_0 = arith.constant 0 : i32
    %c0_i32_1 = arith.constant 0 : i32
    return %c0_i32, %c0_i32_0 : i32, i32
  }
  func.func @transform_3(%arg0: i32) -> (i32, i32) {
    %c0_i32 = arith.constant 0 : i32
    %c0_i32_0 = arith.constant 0 : i32
    %c0_i32_1 = arith.constant 0 : i32
    return %c0_i32, %c0_i32_0 : i32, i32
  }
  func.func @transform_4(%arg0: i32) -> (i32, i32) {
    %c0_i32 = arith.constant 0 : i32
    %c0_i32_0 = arith.constant 0 : i32
    %c0_i32_1 = arith.constant 0 : i32
    return %c0_i32, %c0_i32_0 : i32, i32
  }
  func.func @transform_5(%arg0: i32) -> (i32, i32, i32) {
    %c0_i32 = arith.constant 0 : i32
    %c0_i32_0 = arith.constant 0 : i32
    %c0_i32_1 = arith.constant 0 : i32
    return %arg0, %c0_i32, %c0_i32_0 : i32, i32, i32
  }
}

</mosaic_0001>

<bundles_post_ra>
// kernel: tpu_custom_call.1
= control target key start
LH: loop header
LB: loop body
LE: loop exit
PB: predicated region body
PF: predicated region fallthrough
CT: control target
= control target key end

     0   :  { %10 = vsyncpa [#allocation3], 0  ;;  %s1217_s0 = inlined_call_operand.hbm [shape: f32[2,8,256], index: 0, kind: input, shape index: {}]   ;;  %s1218_s1 = inlined_call_operand.vmem [shape: f32[4,256], index: 1, kind: input, shape index: {}]   ;;  %s1219_s2 = inlined_call_operand.vmem [shape: f32[6,8], index: 2, kind: input, shape index: {}]   ;;  %s1220_s3 = inlined_call_operand.vmem [shape: f32[8,4], index: 3, kind: input, shape index: {}]   ;;  %s1221_s4 = inlined_call_operand.vmem [shape: f32[8,2], index: 4, kind: input, shape index: {}]   ;;  %s1222_s5 = inlined_call_operand.hbm [shape: f32[2,8,256], index: 5, kind: output, shape index: {}]  }
   0x1   :  { %12 = vsyncpa [#allocation3 + $0x1], 0 }
   0x2   :  { %13 = vsyncpa [#allocation4], 0 }
   0x3   :  { %15 = vsyncpa [#allocation4 + $0x1], 0  ;;  %s989_s18 = smov 0   ;;  %s991_s19 = smov 0  }
   0x4   :  { %s993_s20 = smov 0   ;;  %s995_s21 = smov 0  }
   0x5 LB: > { %s1010_s22 = sadd.s32 4294967295, %s948_s21   ;;  %s759_s23 = sadd.s32 4294967294, %s948_s21   ;;  %s948_s21 = sphi %s995_s21, %s1237_s21   ;;  %s944_s20 = sphi %s993_s20, %s1236_s20   ;;  %s940_s19 = sphi %s991_s19, %s1235_s19   ;;  %s936_s18 = sphi %s989_s18, %s1234_s18  }
   0x6   : > { %s1014_s24 = sadd.s32 1, %s948_s21   ;;  %s28_s25 = sadd.s32 1, %s944_s20 }
   0x7   : > { %s25_s26 = ssub.s32 %s948_s21, %s1014_s24  ;;  %p35_p0 = scmp.ne.s32.totalorder %s944_s20, %s940_s19 }
   0x8   : > { %p26_p1 = scmp.eq.s32.totalorder %s25_s26, 0  ;;  %p36_p2 = scmp.eq.s32.totalorder %s948_s21, 0 }
   0x9   : > { %p41_p3 = scmp.ne.s32.totalorder %s940_s19, %s936_s18  ;;  %p42_p4 = scmp.eq.s32.totalorder %s1010_s22, 0 }
   0xa   : > { %s1026_s27 = scalar_select %p26_p1, %s944_s20, %s28_s25  }
   0xb   : > { %p1028_p5 = por %p36_p2, %p35_p0  ;;  %p1032_p6 = por %p42_p4, %p41_p3 }
   0xc   : > { %p149_p7 = scmp.eq.s32.totalorder %s1010_s22, 1  ;;  %p155_p8 = scmp.eq.s32.totalorder %s759_s23, 1 }
   0xd   : > { %p802_p10 = scmp.lt.s32.totalorder %s948_s21, 2  ;;  %s187_s7 = sand.u32 1, %s944_s20  }
   0xe   : > { %p1039_p11 = por %p149_p7, %p35_p0  ;;  %p1043_p12 = por %p155_p8, %p41_p3 }
   0xf   : > { %s781_s8 = sshll.u32 %s948_s21, 8  ;;  %s762_s9 = sshll.u32 %s187_s7, 4 }
  0x10   : > { %s1226_s30 = scalar_select %p1039_p11, 1, 0 }
  0x11   : > { %s1227_s6 = scalar_select %p1043_p12, 1, 0 }
  0x12   : > { %s1052_s12 = scalar_lea.hbm %s1217_s0, %s781_s8  ;;  %s191_s13 = scalar_lea.vmem [#allocation2], %s762_s9 }
  0x13   : > { %s199_s14 = sshll.u32 %s191_s13, 4  ;;  %p1056_p13 = pnand %p802_p10, %p1028_p5  ;;  %s1060_s14 = int_to_ptr.vmem [resolvable:$true] %s199_s14 }
  0x14   : > { %s188_s16 = scalar_lea.sflag [#allocation3], %s187_s7  ;;  %s852_s17 = scalar_lea.hbm %s1052_s12, 256 }
  0x15   : > { %p853_p2 = scmp.ne.s32.totalorder %s1052_s12, %s852_s17  ;;  %p854_p3 = pneg %p1056_p13 }
  0x16   : > { %s857_s26 = scalar_lea.hbm %s1217_s0, 512  ;;  %p858_p5 = scmp.lt.u32.totalorder %s1052_s12, %s1217_s0 }
  0x17   : > { %p855_p4 = pnand %p854_p3, %p853_p2  ;;  %p859_p8 = scmp.lt.u32.totalorder %s857_s26, %s852_s17 }
  0x18   : > { %p861_p9 = scmp.lt.u32.totalorder %s852_s17, %s1052_s12 }
  0x19   : > { %p856_p7 = pneg %p855_p4  ;;  %p860_p10 = por %p859_p8, %p858_p5 }
  0x1b   : > { %p862_p0 = por %p861_p9, %p860_p10 }
  0x1d   : > { %p863_p1 = pnand %p862_p0, %p856_p7 }
  0x1f   : > { %866 = shalt.err (!%p863_p1)
}
  0x20   : > { %s867_s7 = scalar_lea.vmem %s1060_s14, 256  ;;  %s950_s9 = smov [#allocation2]  }
  0x21   : > { %p868_p2 = scmp.ne.s32.totalorder %s1060_s14, %s867_s7  ;;  %s872_s10 = sshll.u32 %s950_s9, 4  ;;  %s873_s10 = int_to_ptr.vmem [resolvable:$false] %s872_s10 }
  0x22   : > { %s874_s11 = scalar_lea.vmem %s873_s10, 512  ;;  %p875_p11 = scmp.lt.s32.totalorder %s1060_s14, %s873_s10 }
  0x23   : > { %p870_p4 = pnand %p868_p2, %p854_p3  ;;  %p876_p5 = scmp.lt.s32.totalorder %s874_s11, %s867_s7 }
  0x25   : > { %p871_p12 = pneg %p870_p4  ;;  %p877_p8 = por %p876_p5, %p875_p11 }
  0x27   : > { %p878_p9 = pnand %p877_p8, %p871_p12 }
  0x29   : > { %881 = shalt.err (!%p878_p9)
}
  0x2a   : > { %797 = dma.hbm_to_vmem [thread:$0]  (!%p1056_p13), %s1052_s12, 256, %s1060_s14, %s188_s16  }
  0x2b   : > { %p1229_p0 = scmp.lt.s32.totalorder %s948_s21, 3  ;;  %p1230_p1 = scmp.ge.s32.totalorder %s948_s21, 1 }
  0x2d   : > { %p205_p3 = pnand %p1230_p1, %p1229_p0 }
  0x2e   : > { %s1094_s13 = sand.u32 (!%p205_p3), 1, %s940_s19  }
  0x2f   : > { %208 = sbr.rel (%p205_p3) target bundleno = 824 (0x338), region = 40  ;;  %s766_s17 = sshll.u32 (!%p205_p3), %s1094_s13, 4 }
  0x30   : > { %s211_s23 = scalar_lea.sflag (!%p205_p3), [#allocation3], %s1094_s13  ;;  %s214_s15 = scalar_lea.vmem (!%p205_p3), [#allocation2], %s766_s17 }
  0x36   : > { %927 = dma.done.wait (%p1032_p6), %s211_s23, 256  }
  0x37   : > { %929 = vsyncadd (%p1032_p6), %s211_s23, 4294967040  ;;  %v951_v0 = vmov 0.0   ;;  %v1104_v1 = vld [vmem:[%s214_s15 + $0x8] sm:$0xff]  ;;  %v1106_v2 = vld [vmem:[%s214_s15] sm:$0xff]  ;;  %vm247_vm0 = vcmask 64512   ;;  %vm477_vm1 = vcmask 1045508   ;;  %v332_v11 = vlaneseq }
  0x38   : > { %315 = vmatprep.mubr.f32.mxu0 %v951_v0  ;;  %785 = vmatprep.subr.mxu1 %v951_v0  ;;  %v242_v3 = vld [vmem:[%s1219_s2] sm:$0x3f]  ;;  %s952_s29 = smov 1   ;;  %s953_s16 = smov 127   ;;  %vm954_vm2 = vmmov 0   ;;  %vm488_vm5 = vcmask 1041408  }
  0x39   : > { %251 = vmatprep.subr.mxu0 %v1104_v1  ;;  %787 = vmatprep.mubr.msk.f32.mxu1 %vm954_vm2, %v951_v0  ;;  %v1121_v12 = vshrl.u32 %v332_v11, 7  ;;  %v1128_v16 = vld [vmem:[%s1218_s1] sm:$0xff]  ;;  %v1130_v17 = vand.u32 127, %v332_v11  ;;  %vm493_vm6 = vcmask 15360   ;;  %s955_s7 = smov 112   ;;  %s956_s9 = smov 16  }
  0x3a   : > { %252 = vmatpush1.msra.mxu0 %v1106_v2  ;;  %v244_v36 = vld [vmem:[%s1221_s4] sm:$0xff]  ;;  %v957_v53 = vmov 0   ;;  %vm578_vm9 = vcmask 1043456   ;;  %vm574_vm10 = vcmask 31744   ;;  %s782_s23 = sshll.u32 %s1010_s22, 8  ;;  %s240_s15 = scalar_lea.vmem [#allocation5], %s766_s17 }
  0x3b   : > { %768 = vmatmul.mubr.msk.f32.vlgmr.msra.gmra.mrb[0].mxu0 %vm247_vm0, %v242_v3  ;;  %v340_v14 = vsub.s32 0, %v1121_v12  ;;  %v344_v15 = vsub.s32 4, %v1121_v12  ;;  %vm334_vm3 = vcmp.lt.s32.totalorder %v1130_v17, 1  ;;  %v375_v21 = vsub.s32 1, %v1121_v12  ;;  %843 = vset.pattern.permute.xlu0 %v957_v53  ;;  %s689_s12 = sshll.u32 %s240_s15, 4  ;;  %s675_s22 = scalar_lea.sflag [#allocation4], %s1094_s13  ;;  %s1175_s12 = int_to_ptr.vmem [resolvable:$true] %s689_s12 }
  0x3c   : > { %649 = vmatprep.mubr.f32.mxu0 %v951_v0  ;;  %v379_v22 = vsub.s32 5, %v1121_v12  ;;  %vm370_vm4 = vcmp.lt.s32.totalorder %v1130_v17, 127  ;;  %v416_v54 = vsub.s32 2, %v1121_v12  ;;  %v420_v55 = vsub.s32 6, %v1121_v12  ;;  %s882_s17 = scalar_lea.vmem %s1175_s12, 256  ;;  %p1231_p11 = scmp.ne.s32.totalorder %s1226_s30, 0 }
  0x3d   : > { %v341_v18 = vrot.slane %v1128_v16, %v340_v14  ;;  %v345_v19 = vrot.slane %v1128_v16, %v344_v15  ;;  %v376_v27 = vrot.slane %v1128_v16, %v375_v21  ;;  %v451_v58 = vsub.s32 3, %v1121_v12  ;;  %p883_p6 = scmp.ne.s32.totalorder %s1175_s12, %s882_s17  ;;  %s958_s25 = smov [#allocation5]  }
  0x3e   : > { %v380_v28 = vrot.slane %v1128_v16, %v379_v22  ;;  %v417_v56 = vrot.slane %v1128_v16, %v416_v54  ;;  %v421_v57 = vrot.slane %v1128_v16, %v420_v55  ;;  %v455_v59 = vsub.s32 7, %v1121_v12  ;;  %s886_s26 = sshll.u32 %s958_s25, 4  ;;  %s887_s26 = int_to_ptr.vmem [resolvable:$false] %s886_s26 }
  0x3f   : > { %v351_v23 = vrot.slane %v341_v18, %v340_v14  ;;  %v355_v24 = vrot.slane %v345_v19, %v340_v14  ;;  %v386_v33 = vrot.slane %v376_v27, %v375_v21  ;;  %vm411_vm7 = vcmp.lt.s32.totalorder %v1130_v17, 16  ;;  %p884_p12 = pnand %p883_p6, %p1231_p11  ;;  %s888_s28 = scalar_lea.vmem %s887_s26, 512 }
  0x40   : > { %v390_v34 = vrot.slane %v380_v28, %v375_v21  ;;  %v427_v61 = vrot.slane %v417_v56, %v416_v54  ;;  %v431_v62 = vrot.slane %v421_v57, %v416_v54  ;;  %v452_v63 = vrot.slane %v1128_v16, %v451_v58  ;;  %p889_p7 = scmp.lt.s32.totalorder %s1175_s12, %s887_s26  ;;  %p890_p10 = scmp.lt.s32.totalorder %s888_s28, %s882_s17 }
  0x41   : > { %v456_v0 = vrot.slane %v1128_v16, %v455_v59  ;;  %vm446_vm8 = vcmp.lt.s32.totalorder %v1130_v17, 112  ;;  %p885_p13 = pneg %p884_p12 }
  0x42   : > { %p891_p2 = por %p890_p10, %p889_p7 }
  0x43   : > { %v466_v11 = vrot.slane %v456_v0, %v451_v58 }
  0x44   : > { %p892_p4 = pnand %p891_p2, %p885_p13 }
 0x10e   : > { %v1113_v4 = vpop.f32.mrb[0].mxu0 }
 0x10f   : > { %v1115_v5 = vpop.f32.mrb[1].mxu0  ;;  %v324_v6 = vrot.slane %v1113_v4, 2  ;;  %v478_v7 = vsel %vm477_vm1, %v1113_v4, 0.0  ;;  %v484_v17 = vmax.f32 %v1113_v4, 0.0 }
 0x110   : > { %v479_v8 = vsel %vm477_vm1, %v1115_v5, 0.0  ;;  %v325_v10 = vrot.slane %v1115_v5, 2  ;;  %v485_v27 = vmax.f32 %v1115_v5, 0.0 }
 0x111   : > { %328 = vrot.lane.b32.xlu0 %v324_v6, %s952_s29  ;;  %v480_v9 = vadd.f32 %v479_v8, %v478_v7 }
 0x113   : > { %481 = vadd.xlane.f32.xlu1 %v480_v9 }
 0x115   : > { %330 = vrot.lane.b32.xlu0 %v325_v10, %s952_s29 }
 0x119   : > { %368 = vrot.lane.b32.xlu0 %v325_v10, %s953_s16  ;;  %v462_v10 = vrot.slane %v452_v63, %v451_v58 }
 0x124   : > { %366 = vrot.lane.b32.xlu1 %v324_v6, %s953_s16  ;;  %s1173_s16 = scalar_lea.hbm %s1222_s5, %s782_s23 }
 0x183   : > { %v329_v13 = vpop.permute.xlu0 %328 }
 0x187   : > { %v331_v20 = vpop.permute.xlu0 %330 }
 0x188   : > { %v335_v25 = vsel %vm334_vm3, %v329_v13, %v331_v20  ;;  %v336_v26 = vsel %vm334_vm3, %v331_v20, %v329_v13 }
 0x189   : > { %v356_v29 = vmul.f32 %v351_v23, %v336_v26  ;;  %v357_v30 = vmul.f32 %v355_v24, %v335_v25 }
 0x18b   : > { %v360_v37 = vrot.slane %v356_v29, 6  ;;  %v361_v38 = vrot.slane %v357_v30, 6  ;;  %v369_v39 = vpop.permute.xlu0 %368 }
 0x18d   : > { %v364_v45 = vadd.f32 %v360_v37, %v1113_v4  ;;  %v365_v46 = vadd.f32 %v361_v38, %v1115_v5 }
 0x1a0   : > { %v482_v31 = vpop.xlane.xlu1 %481 }
 0x1a1   : > { %v483_v32 = vmax.f32 %v482_v31, 0.0 }
 0x1a3   : > { %v492_v35 = vrot.slane %v483_v32, 4  ;;  %v243_v32 = vld [vmem:[%s1220_s3] sm:$0xff] }
 0x1a4   : > { %v367_v40 = vpop.permute.xlu1 %366 }
 0x1a5   : > { %v371_v41 = vsel %vm370_vm4, %v367_v40, %v369_v39  ;;  %v372_v42 = vsel %vm370_vm4, %v369_v39, %v367_v40  ;;  %786 = vmatpush3.msk.msra.mxu1 %vm488_vm5, %v492_v35 }
 0x1a6   : > { %v391_v43 = vmul.f32 %v386_v33, %v371_v41  ;;  %v392_v44 = vmul.f32 %v390_v34, %v372_v42  ;;  %788 = vmatmul.mubr.msk.f32.vlgmr.msra.gmra.mrb[0].mxu1 %vm493_vm6, %v244_v36 }
 0x1a8   : > { %v395_v47 = vrot.slane %v391_v43, 6  ;;  %v396_v48 = vrot.slane %v392_v44, 6 }
 0x1aa   : > { %v399_v49 = vadd.f32 %v395_v47, %v364_v45  ;;  %v400_v50 = vadd.f32 %v396_v48, %v365_v46 }
 0x1ac   : > { %v404_v51 = vrot.slane %v400_v50, 2  ;;  %v403_v52 = vrot.slane %v399_v49, 2 }
 0x1ae   : > { %444 = vrot.lane.b32.xlu1 %v404_v51, %s955_s7  ;;  %407 = vrot.lane.b32.xlu0 %v403_v52, %s956_s9 }
 0x1b2   : > { %409 = vrot.lane.b32.xlu0 %v404_v51, %s956_s9 }
 0x1b6   : > { %442 = vrot.lane.b32.xlu0 %v403_v52, %s955_s7 }
 0x220   : > { %v408_v60 = vpop.permute.xlu0 %407  ;;  %v445_v13 = vpop.permute.xlu1 %444 }
 0x224   : > { %v410_v3 = vpop.permute.xlu0 %409 }
 0x225   : > { %v412_v6 = vsel %vm411_vm7, %v408_v60, %v410_v3  ;;  %v413_v7 = vsel %vm411_vm7, %v410_v3, %v408_v60 }
 0x226   : > { %v432_v8 = vmul.f32 %v427_v61, %v413_v7  ;;  %v433_v9 = vmul.f32 %v431_v62, %v412_v6 }
 0x228   : > { %v436_v12 = vrot.slane %v432_v8, 6  ;;  %v437_v14 = vrot.slane %v433_v9, 6  ;;  %v443_v15 = vpop.permute.xlu0 %442 }
 0x229   : > { %v447_v18 = vsel %vm446_vm8, %v443_v15, %v445_v13  ;;  %v448_v19 = vsel %vm446_vm8, %v445_v13, %v443_v15 }
 0x22a   : > { %v467_v20 = vmul.f32 %v462_v10, %v447_v18  ;;  %v468_v21 = vmul.f32 %v466_v11, %v448_v19  ;;  %v440_v22 = vadd.f32 %v436_v12, %v399_v49  ;;  %v441_v23 = vadd.f32 %v437_v14, %v400_v50 }
 0x22c   : > { %v471_v16 = vrot.slane %v467_v20, 6  ;;  %v472_v24 = vrot.slane %v468_v21, 6 }
 0x22e   : > { %v475_v25 = vadd.f32 %v471_v16, %v440_v22  ;;  %v476_v26 = vadd.f32 %v472_v24, %v441_v23 }
 0x230   : > { %v486_v28 = vmax.f32 %v475_v25, 0.0  ;;  %v487_v29 = vmax.f32 %v476_v26, 0.0 }
 0x232   : > { %v490_v30 = vsel %vm488_vm5, %v485_v27, %v487_v29  ;;  %v489_v31 = vsel %vm488_vm5, %v484_v17, %v486_v28 }
 0x233   : > { %771 = vmatprep.subr.msk.mxu0 %vm578_vm9, %v490_v30 }
 0x234   : > { %772 = vmatpush1.msk.msra.mxu0 %vm578_vm9, %v489_v31 }
 0x235   : > { %773 = vmatmul.mubr.msk.f32.vlgmr.msra.gmra.mrb[2].mxu0 %vm574_vm10, %v243_v32 }
 0x279   : > { %v565_v33 = vpop.f32.mrb[0].mxu1 }
 0x27a   : > { %v789_v34 = vpop.f32.mrb[1].mxu1  ;;  %571 = vperm.xlu0 %843, %v565_v33  }
 0x2f9   : > { %v572_v4 = vpop.permute.xlu0 %571 }
 0x308   : > { %v651_v5 = vpop.f32.mrb[2].mxu0 }
 0x309   : > { %v653_v35 = vpop.f32.mrb[3].mxu0  ;;  %v652_v36 = vadd.f32 %v651_v5, %v572_v4 }
 0x30a   : > { %v654_v37 = vadd.f32 %v653_v35, %v572_v4 }
 0x30b   : > { %v774_v38 = vmul.f32 -1.442695, %v652_v36 }
 0x30c   : > { %v775_v39 = vmul.f32 -1.442695, %v654_v37 }
 0x30d   : > { %844 = vpow2.f32 %v774_v38 }
 0x30e   : > { %846 = vpow2.f32 %v775_v39 }
 0x317   : > { %v845_v40 = vpop.eup %844 }
 0x318   : > { %v847_v41 = vpop.eup %846  ;;  %v662_v42 = vadd.f32 1.0, %v845_v40 }
 0x319   : > { %v663_v43 = vadd.f32 1.0, %v847_v41 }
 0x31a   : > { %848 = vrcp.f32 %v662_v42 }
 0x31b   : > { %850 = vrcp.f32 %v663_v43 }
 0x324   : > { %v849_v44 = vpop.eup %848 }
 0x325   : > { %v851_v45 = vpop.eup %850  ;;  %v668_v46 = vmul.f32 %v849_v44, %v1106_v2 }
 0x326   : > { %v669_v47 = vmul.f32 %v851_v45, %v1104_v1 }
 0x327   : > { %v670_v48 = vadd.f32 %v668_v46, %v1106_v2 }
 0x328   : > { %v671_v49 = vadd.f32 %v669_v47, %v1104_v1 }
 0x329   : > { %672 = vst [vmem:[%s240_s15] sm:$0xff] %v670_v48 }
 0x32a   : > { %673 = vst [vmem:[%s240_s15 + $0x8] sm:$0xff] %v671_v49 }
 0x32b   : > { %895 = shalt.err (!%p892_p4)
}
 0x32c   : > { %s896_s13 = scalar_lea.hbm %s1173_s16, 256  ;;  %s900_s9 = scalar_lea.hbm %s1222_s5, 512 }
 0x32d   : > { %p897_p5 = scmp.ne.s32.totalorder %s1173_s16, %s896_s13  ;;  %p901_p0 = scmp.lt.u32.totalorder %s1173_s16, %s1222_s5 }
 0x32e   : > { %p902_p1 = scmp.lt.u32.totalorder %s900_s9, %s896_s13  ;;  %p904_p6 = scmp.lt.u32.totalorder %s896_s13, %s1173_s16 }
 0x32f   : > { %p898_p8 = pnand %p897_p5, %p1231_p11 }
 0x330   : > { %p903_p3 = por %p902_p1, %p901_p0 }
 0x331   : > { %p899_p9 = pneg %p898_p8 }
 0x332   : > { %p905_p12 = por %p904_p6, %p903_p3 }
 0x334   : > { %p906_p13 = pnand %p905_p12, %p899_p9 }
 0x336   : > { %909 = shalt.err (!%p906_p13)
}
 0x337   : > { %792 = dma.vmem_to_hbm [thread:$0]  (%p1231_p11), %s1175_s12, 256, %s1173_s16, %s675_s22  }
 0x338 PF: > { %s701_s23 = sand.u32 1, %s936_s18   ;;  %p1232_p7 = scmp.ne.s32.totalorder %s1227_s6, 0 }
 0x339   : > { %p1233_p10 = scmp.ge.s32.totalorder %s948_s21, 2  ;;  %s702_s15 = scalar_lea.sflag [#allocation4], %s701_s23 }
 0x33b   : > { %p799_p2 = pnand %p1233_p10, %p1232_p7 }
 0x33d   : > { %931 = dma.done.wait (!%p799_p2), %s702_s15, 256  }
 0x33e   : > { %933 = vsyncadd (!%p799_p2), %s702_s15, 4294967040  ;;  %p18_p4 = scmp.ge.s32.totalorder %s1014_s24, 4   ;;  %s1234_s18 = smov %s940_s19 }
 0x33f   : > { %s1235_s19 = smov %s944_s20  ;;  %s1236_s20 = smov %s1026_s27 }
 0x340   : > { %s1237_s21 = smov %s1014_s24  ;;  %20 = sbr.rel (!%p18_p4) target bundleno = 5 (0x5), region = 85 }
 0x347   :  { %707 = vsyncpa [#allocation3], 1 }
 0x348   :  { %709 = vsyncpa [#allocation3 + $0x1], 1 }
 0x349   :  { %710 = vsyncpa [#allocation4], 1 }
 0x34a   :  { %712 = vsyncpa [#allocation4 + $0x1], 1 }

</bundles_post_ra>
